<compile_context>
chip_gen: v5e
topology: v5e:2x2
jax: 0.10.0
libtpu: 0.0.40
codegen_flags: <defaults>
</compile_context>

<pallas_src>
import functools

import jax
import jax.numpy as jnp
from jax import lax
from jax.experimental import pallas as pl
from jax.experimental.pallas import tpu as pltpu


_TILE_BYTES = 3 * 1024 * 1024   # per-tile budget; 4 tiles live (in+out, 2-deep)
_MIN_GRID_STEPS = 8             # keep both v7x TensorCores fed


def _cdiv(a, b):
    return -(-a // b)


def _hflip_kernel(flag_ref, img_ref, out_ref, *, seg):
    """flag_ref: SMEM (N,) int32 scalar-prefetch ref.
    img_ref/out_ref: VMEM (block_rows, block_w) tiles.

    For flipped images the input index_map already selected the mirrored
    W-block; the kernel only reverses lanes within each `seg`-wide segment
    (seg == block_w except for the folded narrow-W layout)."""
    i = pl.program_id(0)
    do_flip = flag_ref[i] != 0

    @pl.when(do_flip)
    def _():
        bw = out_ref.shape[-1]
        row = lax.broadcasted_iota(jnp.int32, (bw, bw), 0)
        col = lax.broadcasted_iota(jnp.int32, (bw, bw), 1)
        if seg == bw:
            mask = row == (bw - 1) - col
        else:
            # Block-diagonal exchange; seg divides 128 => power of two, so the
            # segment math is add/and only (no integer division on the VPU).
            col_in_seg = col & (seg - 1)
            mask = row == col - col_in_seg + (seg - 1) - col_in_seg
        rev = jnp.where(mask, 1.0, 0.0).astype(out_ref.dtype)
        out_ref[...] = jnp.dot(img_ref[...], rev,
                               preferred_element_type=out_ref.dtype)

    @pl.when(jnp.logical_not(do_flip))
    def _():
        out_ref[...] = img_ref[...]   # pass-through: plain VMEM copy, no MXU


def _plan(N, C, H, W, dtype):
    itemsize = jnp.dtype(dtype).itemsize
    sub = max(8, 32 // itemsize)            # sublane multiple: 8 f32, 16 bf16
    rows = C * H
    pad_rows = 0

    if W % 128 == 0:                        # wide image: mirror 128-lane blocks
        k, seg, lane_w, block_w = 1, 128, W, 128
    elif W < 128 and 128 % W == 0:          # narrow image: fold rows into lanes
        k = 128 // W
        pad_rows = (-rows) % k              # keep stores lane-dense (full 128)
        seg, lane_w, block_w = W, 128, 128
    else:
        # TODO(synk): widths that neither divide nor are a multiple of 128
        # (e.g. 480/720) fall back to a full-width exchange regenerated per
        # step; correct, but can leave the flip branch compute-bound on v5e.
        k, seg, lane_w, block_w = 1, W, W, W

    rows_f = (rows + pad_rows) // k
    num_w_blocks = lane_w // block_w

    # Row tile: largest multiple of `sub` within the byte budget (full extent
    # if it fits — always layout-legal); ragged last block handled by cdiv.
    cap = max(sub, (_TILE_BYTES // (block_w * itemsize)) // sub * sub)
    block_rows = rows_f if rows_f <= cap else cap
    grid_r = _cdiv(rows_f, block_rows)

    # Split rows further if the grid is too small to shard across 2 TCs (v7x).
    while N * num_w_blocks * grid_r < _MIN_GRID_STEPS and block_rows > sub:
        smaller = max(sub, (block_rows // 2) // sub * sub)
        if smaller >= block_rows:
            break
        block_rows = smaller
        grid_r = _cdiv(rows_f, block_rows)

    return k, seg, lane_w, block_w, pad_rows, rows_f, block_rows, grid_r, num_w_blocks


@jax.jit
def random_hflip_with_pose(image, flip_flag):
    """image: (N, C, H, W) float array; flip_flag: (N,) bool/int array."""
    N, C, H, W = image.shape
    if flip_flag.shape[0] != N:
        raise ValueError("flip_flag must have shape (N,)")
    if not jnp.issubdtype(image.dtype, jnp.floating):
        # TODO(synk): integer / fp8 images would need a non-MXU permutation path.
        raise NotImplementedError("random_hflip_with_pose supports float images only")

    (k, seg, lane_w, block_w, pad_rows, rows_f,
     block_rows, grid_r, num_w_blocks) = _plan(N, C, H, W, image.dtype)

    x = image.reshape(N, C * H, W)
    if pad_rows:
        x = jnp.pad(x, ((0, 0), (0, pad_rows), (0, 0)))
    x = x.reshape(N, rows_f, lane_w)        # row-major compatible (free)
    flags = flip_flag.astype(jnp.int32)

    def img_map(i, r, w, flag_ref):
        # Coarse half of the flip: read the mirrored W-block for flipped images.
        w_src = jnp.where(flag_ref[i] != 0, num_w_blocks - 1 - w, w)
        return (i, r, w_src)

    grid_spec = pltpu.PrefetchScalarGridSpec(
        num_scalar_prefetch=1,
        grid=(N, grid_r, num_w_blocks),
        in_specs=[pl.BlockSpec((None, block_rows, block_w), img_map)],
        out_specs=pl.BlockSpec((None, block_rows, block_w),
                               lambda i, r, w, flag_ref: (i, r, w)),
    )

    out = pl.pallas_call(
        functools.partial(_hflip_kernel, seg=seg),
        out_shape=jax.ShapeDtypeStruct((N, rows_f, lane_w), image.dtype),
        grid_spec=grid_spec,
        compiler_params=pltpu.CompilerParams(
            dimension_semantics=("parallel", "parallel", "parallel"),
            vmem_limit_bytes=48 * 1024 * 1024),
    )(flags, x)

    out = out.reshape(N, C * H + pad_rows, W)
    if pad_rows:
        out = out[:, : C * H]
    return out.reshape(N, C, H, W)


def get_flip_flag(key, n_image, p=0.5):
    # Mirrors module.get_flip_flag: rand(n) < p.
    return jax.random.uniform(key, (n_image,)) < p


def _reference(image, flip_flag):
    return jnp.where(flip_flag[:, None, None, None], image[..., ::-1], image)


if __name__ == "__main__":
    key = jax.random.PRNGKey(0)
    k_img, k_flag = jax.random.split(key)

    # Cases: narrow-W fold, 128-wide with ragged row tiles, mirrored multi-block
    # W, narrow-W needing row padding, bf16 (16-row sublane multiple).
    cases = [
        ((2, 4, 16, 16), jnp.float32),
        ((2, 3, 5, 128), jnp.float32),
        ((2, 2, 8, 256), jnp.float32),
        ((2, 3, 7, 16), jnp.float32),
        ((2, 4, 16, 128), jnp.bfloat16),
    ]
    for idx, (shape, dtype) in enumerate(cases):
        kk = jax.random.fold_in(k_img, idx)
        image = jax.random.normal(kk, shape, dtype=jnp.float32).astype(dtype)
        flip_flag = jnp.array([True, False])   # exercise both branches
        out = jax.block_until_ready(random_hflip_with_pose(image, flip_flag))
        ref = _reference(image, flip_flag)
        assert out.shape == image.shape and out.dtype == image.dtype
        assert jnp.allclose(out.astype(jnp.float32), ref.astype(jnp.float32),
                            atol=1e-5, rtol=1e-5), f"mismatch vs reference, case {idx}"

    # Stochastic flag path (mirrors forward(flip_flag=None) via get_flip_flag).
    image = jax.random.normal(k_img, (2, 4, 16, 16), dtype=jnp.float32)
    flags = get_flip_flag(k_flag, image.shape[0], p=0.5)
    out = jax.block_until_ready(random_hflip_with_pose(image, flags))
    assert jnp.allclose(out, _reference(image, flags), atol=1e-5, rtol=1e-5)

    print("KERNEL_OK")
</pallas_src>

<mosaic_0001>
module attributes {stable_mosaic.version = 11 : i64} {
  func.func @_hflip_kernel(%arg0: i32, %arg1: i32, %arg2: i32, %arg3: memref<2xi32, #tpu.memory_space<smem>>, %arg4: memref<1x8x128xf32, #tpu.memory_space<vmem>>, %arg5: memref<1x8x128xf32, #tpu.memory_space<vmem>>) attributes {dimension_semantics = [#tpu.dimension_semantics<parallel>, #tpu.dimension_semantics<parallel>, #tpu.dimension_semantics<parallel>], iteration_bounds = array<i64: 2, 1, 1>, scalar_prefetch = 1 : i64, scratch_operands = 0 : i64, tpu.core_type = #tpu.core_type<tc>, window_params = [{transform_indices = @transform_0, window_bounds = array<i64: 1, 8, 128>}, {transform_indices = @transform_1, window_bounds = array<i64: 1, 8, 128>}]} {
    %0 = arith.index_cast %arg0 : i32 to index
    %1 = memref.load %arg3[%0] : memref<2xi32, #tpu.memory_space<smem>>
    %c0_i32 = arith.constant 0 : i32
    %2 = arith.cmpi ne, %1, %c0_i32 : i32
    %3 = arith.extui %2 : i1 to i32
    %c0_i32_0 = arith.constant 0 : i32
    %4 = arith.cmpi ne, %3, %c0_i32_0 : i32
    scf.if %4 {
      %8 = tpu.iota {dimensions = array<i32: 0>} : vector<128x128xi32>
      %9 = tpu.iota {dimensions = array<i32: 1>} : vector<128x128xi32>
      %c15_i32 = arith.constant 15 : i32
      %10 = vector.broadcast %c15_i32 : i32 to vector<128x128xi32>
      %11 = arith.andi %9, %10 : vector<128x128xi32>
      %12 = arith.subi %9, %11 : vector<128x128xi32>
      %c15_i32_2 = arith.constant 15 : i32
      %13 = vector.broadcast %c15_i32_2 : i32 to vector<128x128xi32>
      %14 = arith.addi %12, %13 : vector<128x128xi32>
      %15 = arith.subi %14, %11 : vector<128x128xi32>
      %16 = arith.cmpi eq, %8, %15 : vector<128x128xi32>
      %cst = arith.constant 1.000000e+00 : f32
      %cst_3 = arith.constant 0.000000e+00 : f32
      %17 = vector.broadcast %cst : f32 to vector<128x128xf32>
      %18 = vector.broadcast %cst_3 : f32 to vector<128x128xf32>
      %19 = arith.select %16, %17, %18 : vector<128x128xi1>, vector<128x128xf32>
      %c0 = arith.constant 0 : index
      %c0_4 = arith.constant 0 : index
      %c0_5 = arith.constant 0 : index
      %20 = vector.load %arg4[%c0, %c0_4, %c0_5] : memref<1x8x128xf32, #tpu.memory_space<vmem>>, vector<1x8x128xf32>
      %21 = vector.shape_cast %20 : vector<1x8x128xf32> to vector<8x128xf32>
      %cst_6 = arith.constant dense<0.000000e+00> : vector<8x128xf32>
      %22 = tpu.matmul %21, %19, %cst_6 {dimension_numbers = #tpu.dot_dimension_numbers<[1], [0], [0], [1], [0, 0, 1, 1], [], []>} : vector<8x128xf32>, vector<128x128xf32>, vector<8x128xf32> -> vector<8x128xf32>
      %c0_7 = arith.constant 0 : index
      %c0_8 = arith.constant 0 : index
      %c0_9 = arith.constant 0 : index
      %23 = vector.load %arg5[%c0_7, %c0_8, %c0_9] : memref<1x8x128xf32, #tpu.memory_space<vmem>>, vector<1x8x128xf32>
      %24 = vector.shape_cast %23 : vector<1x8x128xf32> to vector<8x128xf32>
      %25 = vector.shape_cast %22 : vector<8x128xf32> to vector<1x8x128xf32>
      tpu.vector_store %arg5[%c0_7, %c0_8, %c0_9], %25 {strides = array<i32>} : memref<1x8x128xf32, #tpu.memory_space<vmem>>, vector<1x8x128xf32>,
    } else {
    }
    %true = arith.constant true
    %5 = arith.xori %2, %true : i1
    %6 = arith.extui %5 : i1 to i32
    %c0_i32_1 = arith.constant 0 : i32
    %7 = arith.cmpi ne, %6, %c0_i32_1 : i32
    scf.if %7 {
      %c0 = arith.constant 0 : index
      %c0_2 = arith.constant 0 : index
      %c0_3 = arith.constant 0 : index
      %8 = vector.load %arg4[%c0, %c0_2, %c0_3] : memref<1x8x128xf32, #tpu.memory_space<vmem>>, vector<1x8x128xf32>
      %9 = vector.shape_cast %8 : vector<1x8x128xf32> to vector<8x128xf32>
      %c0_4 = arith.constant 0 : index
      %c0_5 = arith.constant 0 : index
      %c0_6 = arith.constant 0 : index
      %10 = vector.load %arg5[%c0_4, %c0_5, %c0_6] : memref<1x8x128xf32, #tpu.memory_space<vmem>>, vector<1x8x128xf32>
      %11 = vector.shape_cast %10 : vector<1x8x128xf32> to vector<8x128xf32>
      %12 = vector.shape_cast %9 : vector<8x128xf32> to vector<1x8x128xf32>
      tpu.vector_store %arg5[%c0_4, %c0_5, %c0_6], %12 {strides = array<i32>} : memref<1x8x128xf32, #tpu.memory_space<vmem>>, vector<1x8x128xf32>,
    } else {
    }
    return
  }
  func.func @transform_0(%arg0: i32, %arg1: i32, %arg2: i32, %arg3: memref<2xi32, #tpu.memory_space<smem>>) -> (i32, i32, i32) {
    %0 = arith.index_cast %arg0 : i32 to index
    %1 = memref.load %arg3[%0] : memref<2xi32, #tpu.memory_space<smem>>
    %c0_i32 = arith.constant 0 : i32
    %2 = arith.cmpi ne, %1, %c0_i32 : i32
    %c0_i32_0 = arith.constant 0 : i32
    %3 = arith.subi %c0_i32_0, %arg2 : i32
    %4 = arith.select %2, %3, %arg2 : i32
    %c0_i32_1 = arith.constant 0 : i32
    return %arg0, %arg1, %4 : i32, i32, i32
  }
  func.func @transform_1(%arg0: i32, %arg1: i32, %arg2: i32, %arg3: memref<2xi32, #tpu.memory_space<smem>>) -> (i32, i32, i32) {
    %c0_i32 = arith.constant 0 : i32
    return %arg0, %arg1, %arg2 : i32, i32, i32
  }
}

</mosaic_0001>

<bundles_post_ra>
// kernel: random_hflip_with_pose.1
= control target key start
LH: loop header
LB: loop body
LE: loop exit
PB: predicated region body
PF: predicated region fallthrough
CT: control target
= control target key end

     0   :  { %s475_s12 = smov [#allocation3]   ;;  %s540_s0 = inlined_call_operand.vmem [shape: s32[2], index: 0, kind: input, shape index: {}]   ;;  %s541_s1 = inlined_call_operand.vmem [shape: f32[2,8,128], index: 1, kind: input, shape index: {}]   ;;  %s542_s2 = inlined_call_operand.vmem [shape: f32[2,8,128], index: 2, kind: output, shape index: {}]  }
   0x1   :  { %s8_s11 = sshll.u32 %s540_s0, 4  ;;  %s9_s11 = int_to_ptr.vmem [resolvable:$true] %s8_s11 }
   0x2   :  { %11 = dma.vmem_to_smem %s9_s11, 16, %s475_s12, [#allocation2] }
   0x3   :  { %461 = dma.done.wait [#allocation2], 16 }
   0x4   :  { %462 = vsyncadd [#allocation2], 4294967280 }
   0x5   :  { %14 = sfence }
   0x6   :  { %s495_s13 = smov 0   ;;  %s497_s14 = smov 0  }
   0x7   :  { %s499_s15 = smov 0  }
   0x8 LB: > { %s39_s0 = sadd.s32 1, %s469_s14  ;;  %p388_p0 = scmp.ge.s32.totalorder %s473_s15, 1  ;;  %s473_s15 = sphi %s499_s15, %s20_s15   ;;  %s469_s14 = sphi %s497_s14, %s544_s14   ;;  %s465_s13 = sphi %s495_s13, %s543_s13  }
   0x9   : > { %p41_p1 = scmp.ge.s32.totalorder %s39_s0, 2  ;;  %p144_p2 = scmp.lt.s32.totalorder %s473_s15, 3 }
   0xb   : > { %s546_s0 = smov (%p41_p1, %s39_s0), 0  ;;  %p145_p3 = pnand %p388_p0, %p144_p2 }
   0xc   : > { %p182_p4 = scmp.lt.s32.totalorder (!%p145_p3), %s465_s13, 1  ;;  %s513_s16 = sld [smem:[#allocation3 + %s465_s13]] (!%p145_p3) }
   0xd   : > { %148 = sbr.rel (%p145_p3) target bundleno = 206 (0xce), region = 24 }
  0x12   : > { %s548_s13 = smov (!%p182_p4, %s465_s13), 1  ;;  %p391_p5 = scmp.eq.s32.totalorder %s513_s16, 0 }
  0x13   : > { %s389_s17 = sshll.u32 %s548_s13, 3 }
  0x14   : > { %s518_s20 = scalar_lea.vmem %s541_s1, %s389_s17  ;;  %s523_s23 = scalar_lea.vmem %s542_s2, %s389_s17 }
  0x15   : > { %210 = sbr.rel (%p391_p5) target bundleno = 197 (0xc5), region = 28 }
  0x1a   : > { %v211_v0 = vlaneseq  ;;  %v476_v11 = vmov 1.0   ;;  %v266_v23 = vld [vmem:[%s518_s20] sm:$0xff] }
  0x1c   : > { %v229_v1 = vand.u32 127, %v211_v0  ;;  %v212_v2 = vshrl.u32 %v211_v0, 7 }
  0x1e   : > { %v230_v3 = vand.u32 15, %v229_v1  ;;  %v227_v5 = vadd.s32 120, %v212_v2  ;;  %v226_v7 = vadd.s32 112, %v212_v2  ;;  %v225_v9 = vadd.s32 104, %v212_v2 }
  0x1f   : > { %v224_v10 = vadd.s32 96, %v212_v2  ;;  %v223_v12 = vadd.s32 88, %v212_v2  ;;  %v222_v13 = vadd.s32 80, %v212_v2  ;;  %v221_v14 = vadd.s32 72, %v212_v2 }
  0x20   : > { %v231_v4 = vsub.s32 %v229_v1, %v230_v3  ;;  %v220_v15 = vadd.s32 64, %v212_v2  ;;  %v219_v16 = vadd.s32 56, %v212_v2  ;;  %v218_v17 = vadd.s32 48, %v212_v2 }
  0x21   : > { %v217_v18 = vadd.s32 40, %v212_v2  ;;  %v216_v19 = vadd.s32 32, %v212_v2  ;;  %v215_v20 = vadd.s32 24, %v212_v2  ;;  %v214_v21 = vadd.s32 16, %v212_v2 }
  0x22   : > { %v232_v6 = vadd.s32 15, %v231_v4  ;;  %v213_v22 = vadd.s32 8, %v212_v2 }
  0x24   : > { %v233_v8 = vsub.s32 %v232_v6, %v230_v3 }
  0x26   : > { %vm249_vm0 = vcmp.eq.s32.totalorder %v227_v5, %v233_v8  ;;  %vm248_vm1 = vcmp.eq.s32.totalorder %v226_v7, %v233_v8  ;;  %vm247_vm2 = vcmp.eq.s32.totalorder %v225_v9, %v233_v8  ;;  %vm246_vm3 = vcmp.eq.s32.totalorder %v224_v10, %v233_v8 }
  0x27   : > { %392 = vmatpush.msk.msra.mxu0 %vm249_vm0, %v476_v11  ;;  %vm245_vm4 = vcmp.eq.s32.totalorder %v223_v12, %v233_v8  ;;  %vm244_vm5 = vcmp.eq.s32.totalorder %v222_v13, %v233_v8  ;;  %vm243_vm6 = vcmp.eq.s32.totalorder %v221_v14, %v233_v8  ;;  %vm242_vm7 = vcmp.eq.s32.totalorder %v220_v15, %v233_v8 }
  0x28   : > { %vm241_vm8 = vcmp.eq.s32.totalorder %v219_v16, %v233_v8  ;;  %vm240_vm9 = vcmp.eq.s32.totalorder %v218_v17, %v233_v8  ;;  %vm239_vm10 = vcmp.eq.s32.totalorder %v217_v18, %v233_v8  ;;  %vm238_vm11 = vcmp.eq.s32.totalorder %v216_v19, %v233_v8 }
  0x29   : > { %393 = vmatpush.msk.msra.mxu0 %vm248_vm1, %v476_v11  ;;  %vm237_vm12 = vcmp.eq.s32.totalorder %v215_v20, %v233_v8  ;;  %vm236_vm13 = vcmp.eq.s32.totalorder %v214_v21, %v233_v8  ;;  %vm235_vm14 = vcmp.eq.s32.totalorder %v213_v22, %v233_v8  ;;  %vm234_vm15 = vcmp.eq.s32.totalorder %v212_v2, %v233_v8 }
  0x2b   : > { %394 = vmatpush.msk.msra.mxu0 %vm247_vm2, %v476_v11 }
  0x2d   : > { %395 = vmatpush.msk.msra.mxu0 %vm246_vm3, %v476_v11 }
  0x2f   : > { %396 = vmatpush.msk.msra.mxu0 %vm245_vm4, %v476_v11 }
  0x31   : > { %397 = vmatpush.msk.msra.mxu0 %vm244_vm5, %v476_v11 }
  0x33   : > { %398 = vmatpush.msk.msra.mxu0 %vm243_vm6, %v476_v11 }
  0x35   : > { %399 = vmatpush.msk.msra.mxu0 %vm242_vm7, %v476_v11 }
  0x37   : > { %400 = vmatpush.msk.msra.mxu0 %vm241_vm8, %v476_v11 }
  0x39   : > { %401 = vmatpush.msk.msra.mxu0 %vm240_vm9, %v476_v11 }
  0x3b   : > { %402 = vmatpush.msk.msra.mxu0 %vm239_vm10, %v476_v11 }
  0x3d   : > { %403 = vmatpush.msk.msra.mxu0 %vm238_vm11, %v476_v11 }
  0x3f   : > { %404 = vmatpush.msk.msra.mxu0 %vm237_vm12, %v476_v11 }
  0x41   : > { %405 = vmatpush.msk.msra.mxu0 %vm236_vm13, %v476_v11 }
  0x43   : > { %406 = vmatpush.msk.msra.mxu0 %vm235_vm14, %v476_v11 }
  0x45   : > { %407 = vmatpush.msk.msra.mxu0 %vm234_vm15, %v476_v11 }
  0x46   : > { %283 = vmatmul.f32.vlgmr.msra.gmra.mxu0 %v266_v23 }
  0xc3   : > { %v284_v24 = vpop.f32.mrf.mxu0 }
  0xc4   : > { %287 = vst [vmem:[%s523_s23] sm:$0xff] %v284_v24 }
  0xc5 PF: > { %p408_p6 = scmp.ne.s32.totalorder %s513_s16, 0 }
  0xc7   : > { %291 = sbr.rel (%p408_p6) target bundleno = 206 (0xce), region = 32 }
  0xcc   : > { %v292_v25 = vld [vmem:[%s518_s20] sm:$0xff] }
  0xcd   : > { %293 = vst [vmem:[%s523_s23] sm:$0xff] %v292_v25 }
  0xce PF: > { %s20_s15 = sadd.s32 1, %s473_s15   ;;  %s543_s13 = smov %s469_s14 }
  0xcf   : > { %p17_p7 = scmp.ge.s32.totalorder %s20_s15, 4   ;;  %s544_s14 = smov %s546_s0 }
  0xd1   :  { %19 = sbr.rel (!%p17_p7) target bundleno = 8 (0x8), region = 62 }

</bundles_post_ra>
